<compile_context>
chip_gen: v6e
topology: v6e:2x2x1
jax: 0.10.0
libtpu: 0.0.40
codegen_flags: <defaults>
</compile_context>

<pallas_src>
import functools

import jax
import jax.numpy as jnp
from jax.experimental import pallas as pl
from jax.experimental.pallas import tpu as pltpu


def _round_up(x, m):
    return ((x + m - 1) // m) * m


def gat_fused_kernel(h_dst_ref, h_all_ref, w_ref, b_ref, a_dst_ref, a_srcT_ref,
                     a_bias_ref, adj_ref, out_ref, *, num_heads, out_dim):
    """One destination-row tile, all heads fused.

    h_dst_ref : (tq, Din)        dst-tile node features
    h_all_ref : (N, Din)         all node features (source side)
    w_ref     : (Din, H*Dout)    pre-transposed, head-stacked linear weight
    b_ref     : (1, H*Dout)      head-stacked linear bias
    a_dst_ref : (H*Dout, H)      block-diag attention vec (dst half)
    a_srcT_ref: (H, H*Dout)      block-diag attention vec (src half, row-major)
    a_bias_ref: (H,)  in SMEM    attention bias per head
    adj_ref   : (tq, N) int8     adjacency rows for this dst tile
    out_ref   : (tq, H*Dout)     concatenated head outputs (lane-dense)
    """
    w = w_ref[...]
    b = b_ref[...]

    # z for all source nodes and for the dst tile, ALL heads in one matmul.
    z_src = jnp.dot(h_all_ref[...], w, preferred_element_type=jnp.float32) + b  # (N, HD)
    z_dst = jnp.dot(h_dst_ref[...], w, preferred_element_type=jnp.float32) + b  # (tq, HD)

    # Attention projections for every head at once (MXU, not XLU reductions):
    #   e_dst[i, k]  = z_k(dst i) . a_dst_k        -> (tq, H)
    #   e_srcT[k, j] = z_k(src j) . a_src_k        -> (H, N)   (already row-major over src)
    e_dst = jnp.dot(z_dst, a_dst_ref[...], preferred_element_type=jnp.float32)
    e_srcT = jax.lax.dot_general(
        a_srcT_ref[...], z_src,
        dimension_numbers=(((1,), (1,)), ((), ())),
        preferred_element_type=jnp.float32)

    mask = adj_ref[...] != 0                       # (tq, N) bool
    neg_big = jnp.float32(-1e30)                   # finite sentinel (no NaN on empty rows)

    for k in range(num_heads):                     # H is small & static -> unrolled
        e = e_dst[:, k:k + 1] + e_srcT[k:k + 1, :] + a_bias_ref[k]     # (tq, N)
        e = jnp.where(e > 0, e, 0.01 * e)          # leaky_relu, negative_slope=0.01
        scores = jnp.where(mask, e, neg_big)
        m = jnp.max(scores, axis=1, keepdims=True)                     # (tq, 1)
        p = jnp.where(mask, jnp.exp(scores - m), 0.0)                  # (tq, N)
        denom = jnp.maximum(jnp.sum(p, axis=1, keepdims=True), 1e-30)  # (tq, 1)

        z_k = z_src[:, k * out_dim:(k + 1) * out_dim]                  # (N, Dout)
        acc = jnp.dot(p, z_k, preferred_element_type=jnp.float32)      # (tq, Dout)

        # Deferred normalization: one reciprocal per row, Dout multiplies.
        inv = pl.reciprocal(denom)
        out_ref[:, k * out_dim:(k + 1) * out_dim] = (acc * inv).astype(out_ref.dtype)


def multi_head_gat(h, W, b, a_src, a_dst, a_b, adj, merge="cat", tile_dst=256):
    """h: (N, Din); W: (H, Dout, Din); b/a_src/a_dst: (H, 1, Dout);
    a_b: (H, 1, 1); adj: (N, N) with adj[dst, src] != 0 for edges."""
    H_heads, Dout, Din = W.shape
    N = h.shape[0]
    HD = H_heads * Dout

    # ---- host-side parameter packing (free, once) ----
    # W_all[din, k*Dout + d] = W[k, d, din]  so  z_all = h @ W_all (+ b_all)
    W_all = jnp.transpose(W, (2, 0, 1)).reshape(Din, HD).astype(jnp.float32)
    b_all = b.reshape(1, HD).astype(jnp.float32)

    A_dst = jnp.zeros((HD, H_heads), jnp.float32)
    A_srcT = jnp.zeros((H_heads, HD), jnp.float32)
    for k in range(H_heads):
        A_dst = A_dst.at[k * Dout:(k + 1) * Dout, k].set(a_dst[k, 0])
        A_srcT = A_srcT.at[k, k * Dout:(k + 1) * Dout].set(a_src[k, 0])
    a_bias = a_b.reshape(H_heads).astype(jnp.float32)

    # ---- dst-row tiling (keeps all temporaries at (tq, N)) ----
    # NOTE: on v7x (64 MiB VMEM) use roughly half the tile you'd use on v5e/v6e.
    assert tile_dst % 32 == 0, "tile_dst must be a multiple of 32 (int8 sublane tile)"
    if N <= tile_dst:
        tq = _round_up(N, 8)
        n_pad = tq
    else:
        tq = tile_dst
        n_pad = _round_up(N, tq)
    pad = n_pad - N

    h_p = jnp.pad(h.astype(jnp.float32), ((0, pad), (0, 0)))
    adj_i8 = jnp.pad((adj != 0).astype(jnp.int8), ((0, pad), (0, pad)))
    n_tiles = n_pad // tq

    kernel = functools.partial(gat_fused_kernel, num_heads=H_heads, out_dim=Dout)

    out = pl.pallas_call(
        kernel,
        out_shape=jax.ShapeDtypeStruct((n_pad, HD), jnp.float32),
        grid=(n_tiles,),
        in_specs=[
            pl.BlockSpec((tq, Din), lambda i: (i, 0)),            # h, dst tile
            pl.BlockSpec((n_pad, Din), lambda i: (0, 0)),         # h, all src (revisited)
            pl.BlockSpec((Din, HD), lambda i: (0, 0)),            # W_all
            pl.BlockSpec((1, HD), lambda i: (0, 0)),              # b_all
            pl.BlockSpec((HD, H_heads), lambda i: (0, 0)),        # A_dst
            pl.BlockSpec((H_heads, HD), lambda i: (0, 0)),        # A_srcT
            pl.BlockSpec(memory_space=pltpu.MemorySpace.SMEM),    # a_bias (scalars)
            pl.BlockSpec((tq, n_pad), lambda i: (i, 0)),          # adj rows (int8)
        ],
        out_specs=pl.BlockSpec((tq, HD), lambda i: (i, 0)),
        compiler_params=pltpu.CompilerParams(
            dimension_semantics=("parallel",),        # dst tiles split across TCs
            vmem_limit_bytes=48 * 1024 * 1024,        # > v5e/v6e scoped default, < v7x physical
        ),
    )(h_p, h_p, W_all, b_all, A_dst, A_srcT, a_bias, adj_i8)      # (n_pad, H*Dout)

    out = out[:N]
    if merge == "cat":
        return out                                    # already (N, H*Dout), no transpose
    return out.reshape(N, H_heads, Dout).mean(axis=1)


def ref_forward(h, W, b, a_src, a_dst, a_b, adj):
    """Pure-JAX reference of the same math (dense GAT, merge='cat')."""
    outs = []
    for k in range(W.shape[0]):
        z = h @ W[k].T + b[k, 0]
        e = (z @ a_dst[k, 0])[:, None] + (z @ a_src[k, 0])[None, :] + a_b[k, 0, 0]
        e = jnp.where(e > 0, e, 0.01 * e)
        scores = jnp.where(adj > 0, e, -jnp.inf)
        alpha = jax.nn.softmax(scores, axis=1)
        outs.append(alpha @ z)
    return jnp.concatenate(outs, axis=1)


if __name__ == "__main__":
    N, IN_DIM, OUT_DIM, NUM_HEADS = 16, 8, 8, 4
    key = jax.random.PRNGKey(0)
    k_h, k_w, k_wb, k_a, k_ab, k_adj = jax.random.split(key, 6)

    # Node features.
    h = jax.random.normal(k_h, (N, IN_DIM), dtype=jnp.float32)

    # Parameter init mirroring the PyTorch module:
    #   linear.weight / cal_att.weight: xavier_normal_ with gain('relu') = sqrt(2)
    #   biases: default nn.Linear init U(-1/sqrt(fan_in), 1/sqrt(fan_in))
    gain = jnp.sqrt(2.0)
    w_std = gain * jnp.sqrt(2.0 / (IN_DIM + OUT_DIM))
    W = w_std * jax.random.normal(k_w, (NUM_HEADS, OUT_DIM, IN_DIM), dtype=jnp.float32)
    b_bound = 1.0 / jnp.sqrt(IN_DIM)
    b = jax.random.uniform(k_wb, (NUM_HEADS, 1, OUT_DIM), dtype=jnp.float32,
                           minval=-b_bound, maxval=b_bound)

    att_std = gain * jnp.sqrt(2.0 / (2 * OUT_DIM + 1))
    att_w = att_std * jax.random.normal(k_a, (NUM_HEADS, 2 * OUT_DIM), dtype=jnp.float32)
    a_src = att_w[:, :OUT_DIM].reshape(NUM_HEADS, 1, OUT_DIM)   # applied to src z
    a_dst = att_w[:, OUT_DIM:].reshape(NUM_HEADS, 1, OUT_DIM)   # applied to dst z
    ab_bound = 1.0 / jnp.sqrt(2 * OUT_DIM)
    a_b = jax.random.uniform(k_ab, (NUM_HEADS, 1, 1), dtype=jnp.float32,
                             minval=-ab_bound, maxval=ab_bound)

    # Deterministic synthetic graph: self-loops + ring + random edges; adj[dst, src].
    eye = jnp.eye(N, dtype=jnp.float32)
    ring = jnp.roll(eye, shift=1, axis=1)
    rand = (jax.random.uniform(k_adj, (N, N)) < 0.25).astype(jnp.float32)
    adj = jnp.clip(eye + ring + rand, 0.0, 1.0)

    out = multi_head_gat(h, W, b, a_src, a_dst, a_b, adj, merge="cat")
    out = jax.block_until_ready(out)

    ref = ref_forward(h, W, b, a_src, a_dst, a_b, adj)
    assert out.shape == (N, NUM_HEADS * OUT_DIM)
    assert jnp.allclose(out, ref, atol=1e-4, rtol=1e-4), float(jnp.max(jnp.abs(out - ref)))

    print("KERNEL_OK")
</pallas_src>

<mosaic_0001>
module attributes {stable_mosaic.version = 11 : i64} {
  func.func @gat_fused_kernel(%arg0: i32, %arg1: memref<16x8xf32, #tpu.memory_space<vmem>>, %arg2: memref<16x8xf32, #tpu.memory_space<vmem>>, %arg3: memref<8x32xf32, #tpu.memory_space<vmem>>, %arg4: memref<1x32xf32, #tpu.memory_space<vmem>>, %arg5: memref<32x4xf32, #tpu.memory_space<vmem>>, %arg6: memref<4x32xf32, #tpu.memory_space<vmem>>, %arg7: memref<4xf32, #tpu.memory_space<smem>>, %arg8: memref<16x16xi8, #tpu.memory_space<vmem>>, %arg9: memref<16x32xf32, #tpu.memory_space<vmem>>) attributes {dimension_semantics = [#tpu.dimension_semantics<parallel>], iteration_bounds = array<i64: 1>, scalar_prefetch = 0 : i64, scratch_operands = 0 : i64, tpu.core_type = #tpu.core_type<tc>, window_params = [{transform_indices = @transform_0, window_bounds = array<i64: 16, 8>}, {pipeline_mode = #tpu.pipeline_mode<synchronous>, transform_indices = @transform_1, window_bounds = array<i64: 16, 8>}, {pipeline_mode = #tpu.pipeline_mode<synchronous>, transform_indices = @transform_2, window_bounds = array<i64: 8, 32>}, {pipeline_mode = #tpu.pipeline_mode<synchronous>, transform_indices = @transform_3, window_bounds = array<i64: 1, 32>}, {pipeline_mode = #tpu.pipeline_mode<synchronous>, transform_indices = @transform_4, window_bounds = array<i64: 32, 4>}, {pipeline_mode = #tpu.pipeline_mode<synchronous>, transform_indices = @transform_5, window_bounds = array<i64: 4, 32>}, {transform_indices = @transform_6, window_bounds = array<i64: 4>}, {transform_indices = @transform_7, window_bounds = array<i64: 16, 16>}, {transform_indices = @transform_8, window_bounds = array<i64: 16, 32>}]} {
    %c0 = arith.constant 0 : index
    %c0_0 = arith.constant 0 : index
    %0 = vector.load %arg3[%c0, %c0_0] : memref<8x32xf32, #tpu.memory_space<vmem>>, vector<8x32xf32>
    %c0_1 = arith.constant 0 : index
    %c0_2 = arith.constant 0 : index
    %1 = vector.load %arg4[%c0_1, %c0_2] : memref<1x32xf32, #tpu.memory_space<vmem>>, vector<1x32xf32>
    %c0_3 = arith.constant 0 : index
    %c0_4 = arith.constant 0 : index
    %2 = vector.load %arg2[%c0_3, %c0_4] : memref<16x8xf32, #tpu.memory_space<vmem>>, vector<16x8xf32>
    %cst = arith.constant dense<0.000000e+00> : vector<16x32xf32>
    %3 = tpu.matmul %2, %0, %cst {dimension_numbers = #tpu.dot_dimension_numbers<[1], [0], [0], [1], [0, 0, 1, 1], [], []>} : vector<16x8xf32>, vector<8x32xf32>, vector<16x32xf32> -> vector<16x32xf32>
    %4 = vector.broadcast %1 : vector<1x32xf32> to vector<16x32xf32>
    %5 = arith.addf %3, %4 : vector<16x32xf32>
    %c0_5 = arith.constant 0 : index
    %c0_6 = arith.constant 0 : index
    %6 = vector.load %arg1[%c0_5, %c0_6] : memref<16x8xf32, #tpu.memory_space<vmem>>, vector<16x8xf32>
    %cst_7 = arith.constant dense<0.000000e+00> : vector<16x32xf32>
    %7 = tpu.matmul %6, %0, %cst_7 {dimension_numbers = #tpu.dot_dimension_numbers<[1], [0], [0], [1], [0, 0, 1, 1], [], []>} : vector<16x8xf32>, vector<8x32xf32>, vector<16x32xf32> -> vector<16x32xf32>
    %8 = vector.broadcast %1 : vector<1x32xf32> to vector<16x32xf32>
    %9 = arith.addf %7, %8 : vector<16x32xf32>
    %c0_8 = arith.constant 0 : index
    %c0_9 = arith.constant 0 : index
    %10 = vector.load %arg5[%c0_8, %c0_9] : memref<32x4xf32, #tpu.memory_space<vmem>>, vector<32x4xf32>
    %cst_10 = arith.constant dense<0.000000e+00> : vector<16x4xf32>
    %11 = tpu.matmul %9, %10, %cst_10 {dimension_numbers = #tpu.dot_dimension_numbers<[1], [0], [0], [1], [0, 0, 1, 1], [], []>} : vector<16x32xf32>, vector<32x4xf32>, vector<16x4xf32> -> vector<16x4xf32>
    %c0_11 = arith.constant 0 : index
    %c0_12 = arith.constant 0 : index
    %12 = vector.load %arg6[%c0_11, %c0_12] : memref<4x32xf32, #tpu.memory_space<vmem>>, vector<4x32xf32>
    %cst_13 = arith.constant dense<0.000000e+00> : vector<4x16xf32>
    %13 = tpu.matmul %12, %5, %cst_13 {dimension_numbers = #tpu.dot_dimension_numbers<[1], [1], [0], [0], [0, 0, 1, 0], [], []>} : vector<4x32xf32>, vector<16x32xf32>, vector<4x16xf32> -> vector<4x16xf32>
    %c0_14 = arith.constant 0 : index
    %c0_15 = arith.constant 0 : index
    %14 = vector.load %arg8[%c0_14, %c0_15] : memref<16x16xi8, #tpu.memory_space<vmem>>, vector<16x16xi8>
    %c0_i8 = arith.constant 0 : i8
    %15 = vector.broadcast %c0_i8 : i8 to vector<16x16xi8>
    %16 = arith.cmpi ne, %14, %15 : vector<16x16xi8>
    %17 = vector.extract_strided_slice %11 {offsets = [0, 0], sizes = [16, 1], strides = [1, 1]} : vector<16x4xf32> to vector<16x1xf32>
    %18 = vector.extract_strided_slice %13 {offsets = [0, 0], sizes = [1, 16], strides = [1, 1]} : vector<4x16xf32> to vector<1x16xf32>
    %19 = vector.broadcast %17 : vector<16x1xf32> to vector<16x16xf32>
    %20 = vector.broadcast %18 : vector<1x16xf32> to vector<16x16xf32>
    %21 = arith.addf %19, %20 : vector<16x16xf32>
    %c0_16 = arith.constant 0 : index
    %22 = memref.load %arg7[%c0_16] : memref<4xf32, #tpu.memory_space<smem>>
    %23 = vector.broadcast %22 : f32 to vector<16x16xf32>
    %24 = arith.addf %21, %23 : vector<16x16xf32>
    %cst_17 = arith.constant 0.000000e+00 : f32
    %25 = vector.broadcast %cst_17 : f32 to vector<16x16xf32>
    %26 = arith.cmpf ogt, %24, %25 : vector<16x16xf32>
    %cst_18 = arith.constant 0.00999999977 : f32
    %27 = vector.broadcast %cst_18 : f32 to vector<16x16xf32>
    %28 = arith.mulf %27, %24 : vector<16x16xf32>
    %29 = arith.select %26, %24, %28 : vector<16x16xi1>, vector<16x16xf32>
    %cst_19 = arith.constant -1.000000e+30 : f32
    %30 = vector.broadcast %cst_19 : f32 to vector<16x16xf32>
    %31 = arith.select %16, %29, %30 : vector<16x16xi1>, vector<16x16xf32>
    %cst_20 = arith.constant dense<0xFF800000> : vector<16xf32>
    %32 = vector.multi_reduction <maximumf>, %31, %cst_20 [1] : vector<16x16xf32> to vector<16xf32>
    %33 = vector.shape_cast %32 : vector<16xf32> to vector<16x1xf32>
    %34 = vector.broadcast %33 : vector<16x1xf32> to vector<16x16xf32>
    %35 = arith.subf %31, %34 : vector<16x16xf32>
    %36 = math.exp %35 : vector<16x16xf32>
    %cst_21 = arith.constant 0.000000e+00 : f32
    %37 = vector.broadcast %cst_21 : f32 to vector<16x16xf32>
    %38 = arith.select %16, %36, %37 : vector<16x16xi1>, vector<16x16xf32>
    %cst_22 = arith.constant dense<0.000000e+00> : vector<16xf32>
    %39 = vector.multi_reduction <add>, %38, %cst_22 [1] : vector<16x16xf32> to vector<16xf32>
    %40 = vector.shape_cast %39 : vector<16xf32> to vector<16x1xf32>
    %cst_23 = arith.constant 1.000000e-30 : f32
    %41 = vector.broadcast %cst_23 : f32 to vector<16x1xf32>
    %42 = arith.maximumf %40, %41 : vector<16x1xf32>
    %43 = vector.extract_strided_slice %5 {offsets = [0, 0], sizes = [16, 8], strides = [1, 1]} : vector<16x32xf32> to vector<16x8xf32>
    %cst_24 = arith.constant dense<0.000000e+00> : vector<16x8xf32>
    %44 = tpu.matmul %38, %43, %cst_24 {dimension_numbers = #tpu.dot_dimension_numbers<[1], [0], [0], [1], [0, 0, 1, 1], [], []>} : vector<16x16xf32>, vector<16x8xf32>, vector<16x8xf32> -> vector<16x8xf32>
    %45 = tpu.reciprocal %42 : vector<16x1xf32> -> vector<16x1xf32>
    %46 = vector.broadcast %45 : vector<16x1xf32> to vector<16x8xf32>
    %47 = arith.mulf %44, %46 : vector<16x8xf32>
    %c0_25 = arith.constant 0 : index
    %c0_26 = arith.constant 0 : index
    %48 = vector.load %arg9[%c0_25, %c0_26] : memref<16x32xf32, #tpu.memory_space<vmem>>, vector<16x8xf32>
    tpu.vector_store %arg9[%c0_25, %c0_26], %47 {strides = array<i32>} : memref<16x32xf32, #tpu.memory_space<vmem>>, vector<16x8xf32>,
    %49 = vector.extract_strided_slice %11 {offsets = [0, 1], sizes = [16, 1], strides = [1, 1]} : vector<16x4xf32> to vector<16x1xf32>
    %50 = vector.extract_strided_slice %13 {offsets = [1, 0], sizes = [1, 16], strides = [1, 1]} : vector<4x16xf32> to vector<1x16xf32>
    %51 = vector.broadcast %49 : vector<16x1xf32> to vector<16x16xf32>
    %52 = vector.broadcast %50 : vector<1x16xf32> to vector<16x16xf32>
    %53 = arith.addf %51, %52 : vector<16x16xf32>
    %c1 = arith.constant 1 : index
    %54 = memref.load %arg7[%c1] : memref<4xf32, #tpu.memory_space<smem>>
    %55 = vector.broadcast %54 : f32 to vector<16x16xf32>
    %56 = arith.addf %53, %55 : vector<16x16xf32>
    %cst_27 = arith.constant 0.000000e+00 : f32
    %57 = vector.broadcast %cst_27 : f32 to vector<16x16xf32>
    %58 = arith.cmpf ogt, %56, %57 : vector<16x16xf32>
    %cst_28 = arith.constant 0.00999999977 : f32
    %59 = vector.broadcast %cst_28 : f32 to vector<16x16xf32>
    %60 = arith.mulf %59, %56 : vector<16x16xf32>
    %61 = arith.select %58, %56, %60 : vector<16x16xi1>, vector<16x16xf32>
    %cst_29 = arith.constant -1.000000e+30 : f32
    %62 = vector.broadcast %cst_29 : f32 to vector<16x16xf32>
    %63 = arith.select %16, %61, %62 : vector<16x16xi1>, vector<16x16xf32>
    %cst_30 = arith.constant dense<0xFF800000> : vector<16xf32>
    %64 = vector.multi_reduction <maximumf>, %63, %cst_30 [1] : vector<16x16xf32> to vector<16xf32>
    %65 = vector.shape_cast %64 : vector<16xf32> to vector<16x1xf32>
    %66 = vector.broadcast %65 : vector<16x1xf32> to vector<16x16xf32>
    %67 = arith.subf %63, %66 : vector<16x16xf32>
    %68 = math.exp %67 : vector<16x16xf32>
    %cst_31 = arith.constant 0.000000e+00 : f32
    %69 = vector.broadcast %cst_31 : f32 to vector<16x16xf32>
    %70 = arith.select %16, %68, %69 : vector<16x16xi1>, vector<16x16xf32>
    %cst_32 = arith.constant dense<0.000000e+00> : vector<16xf32>
    %71 = vector.multi_reduction <add>, %70, %cst_32 [1] : vector<16x16xf32> to vector<16xf32>
    %72 = vector.shape_cast %71 : vector<16xf32> to vector<16x1xf32>
    %cst_33 = arith.constant 1.000000e-30 : f32
    %73 = vector.broadcast %cst_33 : f32 to vector<16x1xf32>
    %74 = arith.maximumf %72, %73 : vector<16x1xf32>
    %75 = vector.extract_strided_slice %5 {offsets = [0, 8], sizes = [16, 8], strides = [1, 1]} : vector<16x32xf32> to vector<16x8xf32>
    %cst_34 = arith.constant dense<0.000000e+00> : vector<16x8xf32>
    %76 = tpu.matmul %70, %75, %cst_34 {dimension_numbers = #tpu.dot_dimension_numbers<[1], [0], [0], [1], [0, 0, 1, 1], [], []>} : vector<16x16xf32>, vector<16x8xf32>, vector<16x8xf32> -> vector<16x8xf32>
    %77 = tpu.reciprocal %74 : vector<16x1xf32> -> vector<16x1xf32>
    %78 = vector.broadcast %77 : vector<16x1xf32> to vector<16x8xf32>
    %79 = arith.mulf %76, %78 : vector<16x8xf32>
    %c0_35 = arith.constant 0 : index
    %c8 = arith.constant 8 : index
    %80 = vector.load %arg9[%c0_35, %c8] : memref<16x32xf32, #tpu.memory_space<vmem>>, vector<16x8xf32>
    tpu.vector_store %arg9[%c0_35, %c8], %79 {strides = array<i32>} : memref<16x32xf32, #tpu.memory_space<vmem>>, vector<16x8xf32>,
    %81 = vector.extract_strided_slice %11 {offsets = [0, 2], sizes = [16, 1], strides = [1, 1]} : vector<16x4xf32> to vector<16x1xf32>
    %82 = vector.extract_strided_slice %13 {offsets = [2, 0], sizes = [1, 16], strides = [1, 1]} : vector<4x16xf32> to vector<1x16xf32>
    %83 = vector.broadcast %81 : vector<16x1xf32> to vector<16x16xf32>
    %84 = vector.broadcast %82 : vector<1x16xf32> to vector<16x16xf32>
    %85 = arith.addf %83, %84 : vector<16x16xf32>
    %c2 = arith.constant 2 : index
    %86 = memref.load %arg7[%c2] : memref<4xf32, #tpu.memory_space<smem>>
    %87 = vector.broadcast %86 : f32 to vector<16x16xf32>
    %88 = arith.addf %85, %87 : vector<16x16xf32>
    %cst_36 = arith.constant 0.000000e+00 : f32
    %89 = vector.broadcast %cst_36 : f32 to vector<16x16xf32>
    %90 = arith.cmpf ogt, %88, %89 : vector<16x16xf32>
    %cst_37 = arith.constant 0.00999999977 : f32
    %91 = vector.broadcast %cst_37 : f32 to vector<16x16xf32>
    %92 = arith.mulf %91, %88 : vector<16x16xf32>
    %93 = arith.select %90, %88, %92 : vector<16x16xi1>, vector<16x16xf32>
    %cst_38 = arith.constant -1.000000e+30 : f32
    %94 = vector.broadcast %cst_38 : f32 to vector<16x16xf32>
    %95 = arith.select %16, %93, %94 : vector<16x16xi1>, vector<16x16xf32>
    %cst_39 = arith.constant dense<0xFF800000> : vector<16xf32>
    %96 = vector.multi_reduction <maximumf>, %95, %cst_39 [1] : vector<16x16xf32> to vector<16xf32>
    %97 = vector.shape_cast %96 : vector<16xf32> to vector<16x1xf32>
    %98 = vector.broadcast %97 : vector<16x1xf32> to vector<16x16xf32>
    %99 = arith.subf %95, %98 : vector<16x16xf32>
    %100 = math.exp %99 : vector<16x16xf32>
    %cst_40 = arith.constant 0.000000e+00 : f32
    %101 = vector.broadcast %cst_40 : f32 to vector<16x16xf32>
    %102 = arith.select %16, %100, %101 : vector<16x16xi1>, vector<16x16xf32>
    %cst_41 = arith.constant dense<0.000000e+00> : vector<16xf32>
    %103 = vector.multi_reduction <add>, %102, %cst_41 [1] : vector<16x16xf32> to vector<16xf32>
    %104 = vector.shape_cast %103 : vector<16xf32> to vector<16x1xf32>
    %cst_42 = arith.constant 1.000000e-30 : f32
    %105 = vector.broadcast %cst_42 : f32 to vector<16x1xf32>
    %106 = arith.maximumf %104, %105 : vector<16x1xf32>
    %107 = vector.extract_strided_slice %5 {offsets = [0, 16], sizes = [16, 8], strides = [1, 1]} : vector<16x32xf32> to vector<16x8xf32>
    %cst_43 = arith.constant dense<0.000000e+00> : vector<16x8xf32>
    %108 = tpu.matmul %102, %107, %cst_43 {dimension_numbers = #tpu.dot_dimension_numbers<[1], [0], [0], [1], [0, 0, 1, 1], [], []>} : vector<16x16xf32>, vector<16x8xf32>, vector<16x8xf32> -> vector<16x8xf32>
    %109 = tpu.reciprocal %106 : vector<16x1xf32> -> vector<16x1xf32>
    %110 = vector.broadcast %109 : vector<16x1xf32> to vector<16x8xf32>
    %111 = arith.mulf %108, %110 : vector<16x8xf32>
    %c0_44 = arith.constant 0 : index
    %c16 = arith.constant 16 : index
    %112 = vector.load %arg9[%c0_44, %c16] : memref<16x32xf32, #tpu.memory_space<vmem>>, vector<16x8xf32>
    tpu.vector_store %arg9[%c0_44, %c16], %111 {strides = array<i32>} : memref<16x32xf32, #tpu.memory_space<vmem>>, vector<16x8xf32>,
    %113 = vector.extract_strided_slice %11 {offsets = [0, 3], sizes = [16, 1], strides = [1, 1]} : vector<16x4xf32> to vector<16x1xf32>
    %114 = vector.extract_strided_slice %13 {offsets = [3, 0], sizes = [1, 16], strides = [1, 1]} : vector<4x16xf32> to vector<1x16xf32>
    %115 = vector.broadcast %113 : vector<16x1xf32> to vector<16x16xf32>
    %116 = vector.broadcast %114 : vector<1x16xf32> to vector<16x16xf32>
    %117 = arith.addf %115, %116 : vector<16x16xf32>
    %c3 = arith.constant 3 : index
    %118 = memref.load %arg7[%c3] : memref<4xf32, #tpu.memory_space<smem>>
    %119 = vector.broadcast %118 : f32 to vector<16x16xf32>
    %120 = arith.addf %117, %119 : vector<16x16xf32>
    %cst_45 = arith.constant 0.000000e+00 : f32
    %121 = vector.broadcast %cst_45 : f32 to vector<16x16xf32>
    %122 = arith.cmpf ogt, %120, %121 : vector<16x16xf32>
    %cst_46 = arith.constant 0.00999999977 : f32
    %123 = vector.broadcast %cst_46 : f32 to vector<16x16xf32>
    %124 = arith.mulf %123, %120 : vector<16x16xf32>
    %125 = arith.select %122, %120, %124 : vector<16x16xi1>, vector<16x16xf32>
    %cst_47 = arith.constant -1.000000e+30 : f32
    %126 = vector.broadcast %cst_47 : f32 to vector<16x16xf32>
    %127 = arith.select %16, %125, %126 : vector<16x16xi1>, vector<16x16xf32>
    %cst_48 = arith.constant dense<0xFF800000> : vector<16xf32>
    %128 = vector.multi_reduction <maximumf>, %127, %cst_48 [1] : vector<16x16xf32> to vector<16xf32>
    %129 = vector.shape_cast %128 : vector<16xf32> to vector<16x1xf32>
    %130 = vector.broadcast %129 : vector<16x1xf32> to vector<16x16xf32>
    %131 = arith.subf %127, %130 : vector<16x16xf32>
    %132 = math.exp %131 : vector<16x16xf32>
    %cst_49 = arith.constant 0.000000e+00 : f32
    %133 = vector.broadcast %cst_49 : f32 to vector<16x16xf32>
    %134 = arith.select %16, %132, %133 : vector<16x16xi1>, vector<16x16xf32>
    %cst_50 = arith.constant dense<0.000000e+00> : vector<16xf32>
    %135 = vector.multi_reduction <add>, %134, %cst_50 [1] : vector<16x16xf32> to vector<16xf32>
    %136 = vector.shape_cast %135 : vector<16xf32> to vector<16x1xf32>
    %cst_51 = arith.constant 1.000000e-30 : f32
    %137 = vector.broadcast %cst_51 : f32 to vector<16x1xf32>
    %138 = arith.maximumf %136, %137 : vector<16x1xf32>
    %139 = vector.extract_strided_slice %5 {offsets = [0, 24], sizes = [16, 8], strides = [1, 1]} : vector<16x32xf32> to vector<16x8xf32>
    %cst_52 = arith.constant dense<0.000000e+00> : vector<16x8xf32>
    %140 = tpu.matmul %134, %139, %cst_52 {dimension_numbers = #tpu.dot_dimension_numbers<[1], [0], [0], [1], [0, 0, 1, 1], [], []>} : vector<16x16xf32>, vector<16x8xf32>, vector<16x8xf32> -> vector<16x8xf32>
    %141 = tpu.reciprocal %138 : vector<16x1xf32> -> vector<16x1xf32>
    %142 = vector.broadcast %141 : vector<16x1xf32> to vector<16x8xf32>
    %143 = arith.mulf %140, %142 : vector<16x8xf32>
    %c0_53 = arith.constant 0 : index
    %c24 = arith.constant 24 : index
    %144 = vector.load %arg9[%c0_53, %c24] : memref<16x32xf32, #tpu.memory_space<vmem>>, vector<16x8xf32>
    tpu.vector_store %arg9[%c0_53, %c24], %143 {strides = array<i32>} : memref<16x32xf32, #tpu.memory_space<vmem>>, vector<16x8xf32>,
    return
  }
  func.func @transform_0(%arg0: i32) -> (i32, i32) {
    %c0_i32 = arith.constant 0 : i32
    %c0_i32_0 = arith.constant 0 : i32
    return %arg0, %c0_i32 : i32, i32
  }
  func.func @transform_1(%arg0: i32) -> (i32, i32) {
    %c0_i32 = arith.constant 0 : i32
    %c0_i32_0 = arith.constant 0 : i32
    %c0_i32_1 = arith.constant 0 : i32
    return %c0_i32, %c0_i32_0 : i32, i32
  }
  func.func @transform_2(%arg0: i32) -> (i32, i32) {
    %c0_i32 = arith.constant 0 : i32
    %c0_i32_0 = arith.constant 0 : i32
    %c0_i32_1 = arith.constant 0 : i32
    return %c0_i32, %c0_i32_0 : i32, i32
  }
  func.func @transform_3(%arg0: i32) -> (i32, i32) {
    %c0_i32 = arith.constant 0 : i32
    %c0_i32_0 = arith.constant 0 : i32
    %c0_i32_1 = arith.constant 0 : i32
    return %c0_i32, %c0_i32_0 : i32, i32
  }
  func.func @transform_4(%arg0: i32) -> (i32, i32) {
    %c0_i32 = arith.constant 0 : i32
    %c0_i32_0 = arith.constant 0 : i32
    %c0_i32_1 = arith.constant 0 : i32
    return %c0_i32, %c0_i32_0 : i32, i32
  }
  func.func @transform_5(%arg0: i32) -> (i32, i32) {
    %c0_i32 = arith.constant 0 : i32
    %c0_i32_0 = arith.constant 0 : i32
    %c0_i32_1 = arith.constant 0 : i32
    return %c0_i32, %c0_i32_0 : i32, i32
  }
  func.func @transform_6(%arg0: i32) -> i32 {
    %c0_i32 = arith.constant 0 : i32
    %c0_i32_0 = arith.constant 0 : i32
    return %c0_i32 : i32
  }
  func.func @transform_7(%arg0: i32) -> (i32, i32) {
    %c0_i32 = arith.constant 0 : i32
    %c0_i32_0 = arith.constant 0 : i32
    return %arg0, %c0_i32 : i32, i32
  }
  func.func @transform_8(%arg0: i32) -> (i32, i32) {
    %c0_i32 = arith.constant 0 : i32
    %c0_i32_0 = arith.constant 0 : i32
    return %arg0, %c0_i32 : i32, i32
  }
}

</mosaic_0001>

<bundles_post_ra>
// kernel: tpu_custom_call.1
= control target key start
LH: loop header
LB: loop body
LE: loop exit
PB: predicated region body
PF: predicated region fallthrough
CT: control target
= control target key end

     0   :  { %13 = vsyncpa [#allocation4], 0  ;;  %s1423_s0 = inlined_call_operand.vmem [shape: f32[16,8], index: 0, kind: input, shape index: {}]   ;;  %s1424_s1 = inlined_call_operand.vmem [shape: f32[16,8], index: 1, kind: input, shape index: {}]   ;;  %s1425_s2 = inlined_call_operand.vmem [shape: f32[8,32], index: 2, kind: input, shape index: {}]   ;;  %s1426_s3 = inlined_call_operand.vmem [shape: f32[1,32], index: 3, kind: input, shape index: {}]   ;;  %s1427_s4 = inlined_call_operand.vmem [shape: f32[32,4], index: 4, kind: input, shape index: {}]   ;;  %s1428_s5 = inlined_call_operand.vmem [shape: f32[4,32], index: 5, kind: input, shape index: {}]   ;;  %s1429_s6 = inlined_call_operand.vmem [shape: f32[4], index: 6, kind: input, shape index: {}]   ;;  %s1430_s7 = inlined_call_operand.vmem [shape: s8[16,16], index: 7, kind: input, shape index: {}]   ;;  %s1431_s8 = inlined_call_operand.hbm [shape: f32[16,32], index: 8, kind: output, shape index: {}]  }
   0x1   :  { %14 = vsyncpa [#allocation3], 0  ;;  %s33_s29 = sshll.u32 %s1429_s6, 4  ;;  %s34_s29 = int_to_ptr.vmem [resolvable:$true] %s33_s29 }
   0x2   :  { %s1163_s30 = scalar_lea.vmem %s34_s29, 16  ;;  %p1168_p1 = scmp.lt.s32.totalorder %s34_s29, %s34_s29 }
   0x3   :  { %p1164_p0 = scmp.ne.s32.totalorder %s34_s29, %s1163_s30  ;;  %p1169_p2 = scmp.lt.s32.totalorder %s1163_s30, %s1163_s30 }
   0x5   :  { %p1170_p3 = por %p1169_p2, %p1168_p1 }
   0x7   :  { %p1171_p4 = pnand %p1170_p3, %p1164_p0 }
   0x9   :  { %1174 = shalt.err (!%p1171_p4)
}
   0xa   :  { %s1199_s9 = smov [#allocation2]  }
   0xb   :  { %36 = dma.vmem_to_smem %s34_s29, 16, %s1199_s9, [#allocation4]  }
   0xc   :  { %1195 = dma.done.wait [#allocation4], 16  }
   0xd   :  { %1196 = vsyncadd [#allocation4], 4294967280 }
   0xe   :  { %42 = sfence }
   0xf   :  { %v45_v0 = vld [vmem:[%s1425_s2] sm:$0xff]  ;;  %vm55_vm0 = vcmask 64512   ;;  %v138_v2 = vld [vmem:[%s1423_s0 + $0x8] sm:$0xff]  ;;  %v223_v4 = vld [vmem:[%s1427_s4 + $0x18] sm:$0xff]  ;;  %v1200_v9 = vmov 0.0   ;;  %vm1201_vm1 = vmmov 0   ;;  %v400_v28 = vlaneseq }
  0x10   :  { %v137_v1 = vld [vmem:[%s1423_s0] sm:$0xff]  ;;  %1058 = vmatprep.subr.mxu1 %v45_v0  ;;  %1053 = vmatprep.subr.mxu0 %v45_v0  ;;  %v48_v5 = vld [vmem:[%s1424_s1 + $0x8] sm:$0xff]  ;;  %v222_v6 = vld [vmem:[%s1427_s4 + $0x10] sm:$0xff]  ;;  %v1202_v10 = vmov 1   ;;  %v1203_v11 = vmov 0   ;;  %vm224_vm2 = vcmask 261120  }
  0x11   :  { %1060 = vmatprep.mubr.msk.f32.mxu1 %vm55_vm0, %v137_v1  ;;  %v47_v3 = vld [vmem:[%s1424_s1] sm:$0xff]  ;;  %1059 = vmatpush3.msra.mxu1 %v45_v0  ;;  %v221_v7 = vld [vmem:[%s1427_s4 + $0x8] sm:$0xff]  ;;  %v1204_v24 = vmov 2   ;;  %v1205_v27 = vmov 3   ;;  %s1207_s26 = smov 112   ;;  %s1208_s27 = smov 104  }
  0x12   :  { %1061 = vmatmul.mubr.msk.f32.vlgmr.msra.gmra.mxu1 %vm55_vm0, %v138_v2  ;;  %1054 = vmatpush3.msra.mxu0 %v45_v0  ;;  %v220_v8 = vld [vmem:[%s1427_s4] sm:$0xff]  ;;  %v401_v29 = vshrl.u32 %v400_v28, 7  ;;  %s1318_s30 = sld [smem:[#allocation2 + $0x1]]  ;;  %vm424_vm8 = vcmask 130048   ;;  %s1209_s6 = smov 8  }
  0x13   :  { %1055 = vmatprep.mubr.msk.f32.mxu0 %vm55_vm0, %v47_v3  ;;  %1063 = vmatprep.subr.mxu0 %v223_v4  ;;  %v1001_v13 = vld [vmem:[%s1426_s3] ss:$0 sm:$0xff]  ;;  %v387_v30 = vld [vmem:[%s1430_s7 + $0x2] sm:$0x3]  ;;  %s1320_s9 = sld [smem:[#allocation2]]  ;;  %s1210_s13 = smov 16  }
  0x14   :  { %1056 = vmatmul.mubr.msk.f32.vlgmr.msra.gmra.mxu0 %vm55_vm0, %v48_v5  ;;  %1074 = vmatprep.subr.mxu1 %v1200_v9  ;;  %v306_v21 = vld [vmem:[%s1428_s5] sm:$0xf]  ;;  %s1206_s5 = smov 120   ;;  %v544_v31 = vsub.s32 1, %v401_v29  ;;  %v402_v32 = vsub.s32 0, %v401_v29  ;;  %vm389_vm3 = vnez %v387_v30  ;;  %s1325_s12 = sld [smem:[#allocation2 + $0x2]] }
  0x15   :  { %1064 = vmatpush3.msra.mxu0 %v223_v4  ;;  %1078 = vmatprep.mubr.msk.f32.mxu1 %vm1201_vm1, %v1200_v9  ;;  %v386_v33 = vld [vmem:[%s1430_s7] sm:$0x3]  ;;  %v417_v34 = vsel %vm389_vm3, 16843009, %v1203_v11  ;;  %v694_v37 = vsub.s32 2, %v401_v29  ;;  %s1339_s7 = sld [smem:[#allocation2 + $0x3]] }
  0x16   :  { %1065 = vmatprep.subr.mxu0 %v222_v6  ;;  %1125 = vset.pattern.permute.xlu1 %v1202_v10  ;;  %vm388_vm4 = vnez %v386_v33  ;;  %v419_v38 = vunpack.c.0.s8 %v417_v34  ;;  %v844_v2 = vsub.s32 3, %v401_v29  ;;  %s1211_s14 = smov 24   ;;  %vm831_vm1 = vcmask 195712   ;;  %s1212_s15 = smov [#allocation5]  }
  0x17   :  { %1066 = vmatpush3.msra.mxu0 %v222_v6  ;;  %1124 = vset.pattern.permute.xlu0 %v1203_v11  ;;  %v416_v43 = vsel %vm388_vm4, 16843009, %v1203_v11  ;;  %s989_s16 = sshll.u32 %s1212_s15, 4  ;;  %s990_s16 = int_to_ptr.vmem [resolvable:$true] %s989_s16 }
  0x18   :  { %1067 = vmatprep.subr.mxu0 %v221_v7  ;;  %v549_v39 = vstv %s1318_s30  ;;  %v418_v49 = vunpack.c.0.s8 %v416_v43  ;;  %vm1334_vm5 = vcmp.ne.s32.totalorder %v419_v38, 0  ;;  %s1175_s17 = scalar_lea.vmem %s990_s16, 256  ;;  %p1180_p6 = scmp.lt.s32.totalorder %s990_s16, %s990_s16 }
  0x19   :  { %1068 = vmatpush3.msra.mxu0 %v221_v7  ;;  %v407_v41 = vstv %s1320_s9  ;;  %p1176_p5 = scmp.ne.s32.totalorder %s990_s16, %s1175_s17  ;;  %p1181_p7 = scmp.lt.s32.totalorder %s1175_s17, %s1175_s17 }
  0x1a   :  { %1069 = vmatprep.subr.mxu0 %v220_v8  ;;  %v699_v52 = vstv %s1325_s12  ;;  %vm1341_vm9 = vcmp.ne.s32.totalorder %v418_v49, 0 }
  0x1b   :  { %1070 = vmatpush3.msra.mxu0 %v220_v8  ;;  %p1182_p8 = por %p1181_p7, %p1180_p6 }
  0x1d   :  { %p1183_p9 = pnand %p1182_p8, %p1176_p5 }
  0xd2   :  { %v1062_v12 = vpop.f32.mrf.mxu1 }
  0xd3   :  { %v217_v18 = vadd.f32 %v1062_v12, %v1001_v13 }
  0xd4   :  { %v211_v14 = vpop.f32.mrf.mxu1  ;;  %v1057_v15 = vpop.f32.mrf.mxu0 }
  0xd5   :  { %v212_v16 = vadd.f32 %v1001_v13, %v211_v14  ;;  %v134_v17 = vadd.f32 %v1057_v15, %v1001_v13 }
  0xd6   :  { %v128_v19 = vpop.f32.mrf.mxu0 }
  0xd7   :  { %1071 = vmatprep.mubr.msk.f32.mxu0 %vm224_vm2, %v212_v16  ;;  %1075 = vmatpush3.xpose.msk.msra.mxu1 %vm224_vm2, %v134_v17  ;;  %v1299_v20 = vadd.f32 %v1001_v13, %v128_v19 }
  0xd8   :  { %1072 = vmatmul.mubr.msk.f32.vlgmr.msra.gmra.mxu0 %vm224_vm2, %v217_v18  ;;  %1076 = vmatprep.subr.mxu1 %v1200_v9 }
  0xd9   :  { %1081 = vmatprep.subr.mxu0 %v134_v17 }
  0xda   :  { %1082 = vmatpush3.msra.mxu0 %v134_v17 }
  0xdb   :  { %1077 = vmatpush3.xpose.msk.msra.mxu1 %vm224_vm2, %v1299_v20  ;;  %1083 = vmatprep.subr.mxu0 %v1299_v20 }
  0xdc   :  { %1084 = vmatpush3.msra.mxu0 %v1299_v20 }
  0xde   :  { %1079 = vmatmul.mubr.msk.f32.vlgmr.msra.gmra.mxu1 %vm224_vm2, %v306_v21  ;;  %vm981_vm2 = vcmask 261312  }
 0x198   :  { %v1073_v22 = vpop.f32.mrf.mxu0 }
 0x199   :  { %539 = vperm.xlu1 %1125, %v1073_v22   ;;  %397 = vperm.xlu0 %1124, %v1073_v22  }
 0x19a   :  { %v297_v23 = vpop.f32.mrf.mxu0 }
 0x19d   :  { %1126 = vset.pattern.permute.xlu1 %v1204_v24  ;;  %392 = vperm.xlu0 %1124, %v297_v23  }
 0x19e   :  { %689 = vperm.xlu1 %1126, %v1073_v22   ;;  %v1310_v25 = vpop.f32.mrf.mxu1 }
 0x19f   :  { %v545_v35 = vrot.slane %v1310_v25, %v544_v31  ;;  %v403_v36 = vrot.slane %v1310_v25, %v402_v32  ;;  %v695_v46 = vrot.slane %v1310_v25, %v694_v37  ;;  %v845_v14 = vrot.slane %v1310_v25, %v844_v2 }
 0x1a0   :  { %v1080_v26 = vpop.f32.mrf.mxu1 }
 0x1a1   :  { %1128 = vset.pattern.permute.xlu0 %v1204_v24 }
 0x1a2   :  { %1127 = vset.pattern.permute.xlu1 %v1202_v10  ;;  %685 = vperm.xlu0 %1128, %v297_v23  }
 0x1a3   :  { %535 = vperm.xlu1 %1127, %v297_v23  }
 0x1a6   :  { %1130 = vset.pattern.permute.xlu0 %v1205_v27 }
 0x1a7   :  { %1129 = vset.pattern.permute.xlu1 %v1205_v27  ;;  %839 = vperm.xlu0 %1130, %v1073_v22  }
 0x1a8   :  { %835 = vperm.xlu1 %1129, %v297_v23  }
 0x1ab   :  { %582 = vrot.lane.b32.xlu0 %v1299_v20, %s1206_s5 }
 0x1ac   :  { %584 = vrot.lane.b32.xlu1 %v134_v17, %s1206_s5 }
 0x1b0   :  { %734 = vrot.lane.b32.xlu1 %v134_v17, %s1207_s26 }
 0x1b4   :  { %884 = vrot.lane.b32.xlu1 %v134_v17, %s1208_s27  ;;  %v849_v17 = vstv %s1339_s7 }
 0x214   :  { %v540_v40 = vpop.permute.xlu1 %539  ;;  %v398_v42 = vpop.permute.xlu0 %397 }
 0x215   :  { %v547_v44 = vadd.f32 %v545_v35, %v540_v40  ;;  %v405_v45 = vadd.f32 %v403_v36, %v398_v42 }
 0x217   :  { %v551_v47 = vadd.f32 %v549_v39, %v547_v44  ;;  %v409_v48 = vadd.f32 %v407_v41, %v405_v45 }
 0x218   :  { %v393_v51 = vpop.permute.xlu0 %392 }
 0x219   :  { %v404_v53 = vadd.f32 %v403_v36, %v393_v51  ;;  %v690_v54 = vpop.permute.xlu1 %689  ;;  %vm411_vm6 = vcmp.gt.f32.partialorder %v409_v48, 0.0  ;;  %v413_v55 = vmul.f32 0.01, %v409_v48  ;;  %vm553_vm7 = vcmp.gt.f32.partialorder %v551_v47, 0.0 }
 0x21a   :  { %v697_v56 = vadd.f32 %v695_v46, %v690_v54  ;;  %v555_v57 = vmul.f32 0.01, %v551_v47 }
 0x21b   :  { %v408_v58 = vadd.f32 %v407_v41, %v404_v53  ;;  %v415_v59 = vsel %vm411_vm6, %v409_v48, %v413_v55 }
 0x21c   :  { %v701_v61 = vadd.f32 %v699_v52, %v697_v56  ;;  %v1347_v62 = vsel %vm1334_vm5, %v415_v59, -1e+30  ;;  %v557_v63 = vsel %vm553_vm7, %v551_v47, %v555_v57 }
 0x21d   :  { %v686_v0 = vpop.permute.xlu0 %685  ;;  %v428_v1 = vsel %vm424_vm8, %v1347_v62, -inf  ;;  %vm410_vm10 = vcmp.gt.f32.partialorder %v408_v58, 0.0  ;;  %v412_v3 = vmul.f32 0.01, %v408_v58  ;;  %v1353_v6 = vsel %vm1334_vm5, %v557_v63, -1e+30 }
 0x21e   :  { %v696_v4 = vadd.f32 %v695_v46, %v686_v0  ;;  %v536_v5 = vpop.permute.xlu1 %535  ;;  %429 = vmax.xlane.f32.xlu0 %v428_v1  ;;  %vm703_vm11 = vcmp.gt.f32.partialorder %v701_v61, 0.0  ;;  %v705_v7 = vmul.f32 0.01, %v701_v61  ;;  %v563_v15 = vsel %vm424_vm8, %v1353_v6, -inf }
 0x21f   :  { %v546_v8 = vadd.f32 %v545_v35, %v536_v5  ;;  %v414_v9 = vsel %vm410_vm10, %v408_v58, %v412_v3 }
 0x220   :  { %v700_v10 = vadd.f32 %v699_v52, %v696_v4  ;;  %v422_v11 = vsel %vm1341_vm9, %v414_v9, -1e+30  ;;  %v707_v12 = vsel %vm703_vm11, %v701_v61, %v705_v7 }
 0x221   :  { %v550_v13 = vadd.f32 %v549_v39, %v546_v8  ;;  %v425_v16 = vsel %vm424_vm8, %v422_v11, -inf  ;;  %v709_v19 = vsel %vm1334_vm5, %v707_v12, -1e+30 }
 0x222   :  { %v840_v18 = vpop.permute.xlu0 %839  ;;  %564 = vmax.xlane.f32.xlu0 %v563_v15  ;;  %426 = vmax.xlane.f32.xlu1 %v425_v16  ;;  %v704_v21 = vmul.f32 0.01, %v700_v10  ;;  %vm702_vm13 = vcmp.gt.f32.partialorder %v700_v10, 0.0  ;;  %v713_v27 = vsel %vm424_vm8, %v709_v19, -inf }
 0x223   :  { %v847_v22 = vadd.f32 %v845_v14, %v840_v18  ;;  %v836_v23 = vpop.permute.xlu1 %835  ;;  %vm552_vm12 = vcmp.gt.f32.partialorder %v550_v13, 0.0  ;;  %v554_v24 = vmul.f32 0.01, %v550_v13 }
 0x224   :  { %v846_v26 = vadd.f32 %v845_v14, %v836_v23  ;;  %v706_v31 = vsel %vm702_vm13, %v700_v10, %v704_v21 }
 0x225   :  { %v851_v25 = vadd.f32 %v849_v17, %v847_v22  ;;  %v556_v28 = vsel %vm552_vm12, %v550_v13, %v554_v24  ;;  %v708_v38 = vsel %vm1341_vm9, %v706_v31, -1e+30 }
 0x226   :  { %v850_v29 = vadd.f32 %v849_v17, %v846_v26  ;;  %714 = vmax.xlane.f32.xlu0 %v713_v27  ;;  %v558_v30 = vsel %vm1341_vm9, %v556_v28, -1e+30  ;;  %v583_v36 = vpop.permute.xlu0 %582  ;;  %v710_v43 = vsel %vm424_vm8, %v708_v38, -inf }
 0x227   :  { %v585_v32 = vpop.permute.xlu1 %584  ;;  %v560_v33 = vsel %vm424_vm8, %v558_v30, -inf  ;;  %vm853_vm14 = vcmp.gt.f32.partialorder %v851_v25, 0.0  ;;  %v855_v34 = vmul.f32 0.01, %v851_v25 }
 0x228   :  { %1088 = vmatprep.subr.mxu1 %v585_v32  ;;  %561 = vmax.xlane.f32.xlu1 %v560_v33  ;;  %vm852_vm15 = vcmp.gt.f32.partialorder %v850_v29, 0.0  ;;  %v854_v35 = vmul.f32 0.01, %v850_v29 }
 0x229   :  { %1089 = vmatpush3.msra.mxu1 %v585_v32  ;;  %v857_v37 = vsel %vm853_vm14, %v851_v25, %v855_v34 }
 0x22a   :  { %1090 = vmatprep.subr.mxu1 %v583_v36  ;;  %v859_v39 = vsel %vm1334_vm5, %v857_v37, -1e+30  ;;  %v856_v40 = vsel %vm852_vm15, %v850_v29, %v854_v35 }
 0x22b   :  { %v735_v41 = vpop.permute.xlu1 %734  ;;  %1091 = vmatpush3.msra.mxu1 %v583_v36  ;;  %v863_v42 = vsel %vm424_vm8, %v859_v39, -inf  ;;  %v858_v44 = vsel %vm1341_vm9, %v856_v40, -1e+30 }
 0x22c   :  { %1095 = vmatprep.subr.mxu0 %v735_v41  ;;  %864 = vmax.xlane.f32.xlu0 %v863_v42  ;;  %v860_v46 = vsel %vm424_vm8, %v858_v44, -inf }
 0x22d   :  { %711 = vmax.xlane.f32.xlu1 %v710_v43 }
 0x22f   :  { %v885_v45 = vpop.permute.xlu1 %884 }
 0x230   :  { %1102 = vmatprep.subr.mxu1 %v885_v45 }
 0x231   :  { %861 = vmax.xlane.f32.xlu1 %v860_v46 }
 0x242   :  { %882 = vrot.lane.b32.xlu1 %v1299_v20, %s1208_s27  ;;  %732 = vrot.lane.b32.xlu0 %v1299_v20, %s1207_s26 }
 0x2a7   :  { %v430_v47 = vpop.xlane.xlu0 %429 }
 0x2a8   :  { %v432_v48 = vsub.f32 %v1347_v62, %v430_v47 }
 0x2aa   :  { %v435_v49 = vmul.f32 1.442695, %v432_v48 }
 0x2ab   :  { %v565_v51 = vpop.xlane.xlu0 %564  ;;  %v427_v52 = vpop.xlane.xlu1 %426 }
 0x2ac   :  { %v567_v53 = vsub.f32 %v1353_v6, %v565_v51  ;;  %v431_v54 = vsub.f32 %v422_v11, %v427_v52  ;;  %1131 = vpow2.f32 %v435_v49 }
 0x2ae   :  { %v570_v55 = vmul.f32 1.442695, %v567_v53  ;;  %v433_v56 = vmul.f32 1.442695, %v431_v54 }
 0x2af   :  { %v715_v57 = vpop.xlane.xlu0 %714 }
 0x2b0   :  { %1133 = vpow2.f32 %v570_v55  ;;  %v717_v58 = vsub.f32 %v709_v19, %v715_v57 }
 0x2b1   :  { %1135 = vpow2.f32 %v433_v56  ;;  %v562_v59 = vpop.xlane.xlu1 %561 }
 0x2b2   :  { %v720_v61 = vmul.f32 1.442695, %v717_v58  ;;  %v566_v63 = vsub.f32 %v558_v30, %v562_v59 }
 0x2b4   :  { %1137 = vpow2.f32 %v720_v61  ;;  %v568_v20 = vmul.f32 1.442695, %v566_v63 }
 0x2b5   :  { %v865_v0 = vpop.xlane.xlu0 %864 }
 0x2b6   :  { %1139 = vpow2.f32 %v568_v20  ;;  %v867_v62 = vsub.f32 %v859_v39, %v865_v0  ;;  %v712_v1 = vpop.xlane.xlu1 %711 }
 0x2b7   :  { %v716_v2 = vsub.f32 %v708_v38, %v712_v1 }
 0x2b8   :  { %v870_v3 = vmul.f32 1.442695, %v867_v62 }
 0x2b9   :  { %v718_v4 = vmul.f32 1.442695, %v716_v2  ;;  %v1132_v7 = vpop.eup %1131  ;;  %v733_v16 = vpop.permute.xlu0 %732 }
 0x2ba   :  { %v862_v5 = vpop.xlane.xlu1 %861  ;;  %v438_v14 = vsel %vm1334_vm5, %v1132_v7, 0.0 }
 0x2bb   :  { %1141 = vpow2.f32 %v718_v4  ;;  %v866_v6 = vsub.f32 %v858_v44, %v862_v5  ;;  %v442_v34 = vsel %vm424_vm8, %v438_v14, 0.0 }
 0x2bc   :  { %1143 = vpow2.f32 %v870_v3 }
 0x2bd   :  { %v1134_v8 = vpop.eup %1133  ;;  %v868_v9 = vmul.f32 1.442695, %v866_v6 }
 0x2be   :  { %v1136_v10 = vpop.eup %1135  ;;  %v573_v11 = vsel %vm1334_vm5, %v1134_v8, 0.0  ;;  %v883_v22 = vpop.permute.xlu1 %882 }
 0x2bf   :  { %1145 = vpow2.f32 %v868_v9  ;;  %v437_v12 = vsel %vm1341_vm9, %v1136_v10, 0.0  ;;  %v577_v13 = vsel %vm424_vm8, %v573_v11, 0.0 }
 0x2c0   :  { %1085 = vmatprep.mubr.msk.f32.mxu0 %vm424_vm8, %v437_v12  ;;  %578 = vadd.xlane.f32.xlu1 %v577_v13  ;;  %v439_v33 = vsel %vm424_vm8, %v437_v12, 0.0 }
 0x2c1   :  { %v1138_v15 = vpop.eup %1137  ;;  %1086 = vmatmul.mubr.msk.f32.vlgmr.msra.gmra.mxu0 %vm424_vm8, %v438_v14 }
 0x2c2   :  { %1096 = vmatpush3.msra.mxu0 %v735_v41  ;;  %v723_v17 = vsel %vm1334_vm5, %v1138_v15, 0.0 }
 0x2c3   :  { %v1140_v18 = vpop.eup %1139  ;;  %1097 = vmatprep.subr.mxu0 %v733_v16  ;;  %v727_v19 = vsel %vm424_vm8, %v723_v17, 0.0 }
 0x2c4   :  { %1098 = vmatpush3.msra.mxu0 %v733_v16  ;;  %728 = vadd.xlane.f32.xlu0 %v727_v19  ;;  %v572_v21 = vsel %vm1341_vm9, %v1140_v18, 0.0 }
 0x2c5   :  { %1092 = vmatprep.mubr.msk.f32.mxu1 %vm424_vm8, %v572_v21  ;;  %v574_v23 = vsel %vm424_vm8, %v572_v21, 0.0 }
 0x2c6   :  { %1093 = vmatmul.mubr.msk.f32.vlgmr.msra.gmra.mxu1 %vm424_vm8, %v573_v11 }
 0x2c7   :  { %1103 = vmatpush3.msra.mxu1 %v885_v45 }
 0x2c8   :  { %v1142_v24 = vpop.eup %1141  ;;  %1104 = vmatprep.subr.mxu1 %v883_v22  ;;  %575 = vadd.xlane.f32.xlu0 %v574_v23 }
 0x2c9   :  { %v1144_v26 = vpop.eup %1143  ;;  %1105 = vmatpush3.msra.mxu1 %v883_v22  ;;  %v722_v25 = vsel %vm1341_vm9, %v1142_v24, 0.0 }
 0x2ca   :  { %1099 = vmatprep.mubr.msk.f32.mxu0 %vm424_vm8, %v722_v25  ;;  %v724_v27 = vsel %vm424_vm8, %v722_v25, 0.0  ;;  %v873_v29 = vsel %vm1334_vm5, %v1144_v26, 0.0 }
 0x2cb   :  { %1100 = vmatmul.mubr.msk.f32.vlgmr.msra.gmra.mxu0 %vm424_vm8, %v723_v17  ;;  %v877_v32 = vsel %vm424_vm8, %v873_v29, 0.0 }
 0x2cc   :  { %v1146_v28 = vpop.eup %1145  ;;  %725 = vadd.xlane.f32.xlu0 %v724_v27 }
 0x2cd   :  { %v872_v30 = vsel %vm1341_vm9, %v1146_v28, 0.0 }
 0x2ce   :  { %1106 = vmatprep.mubr.msk.f32.mxu1 %vm424_vm8, %v872_v30  ;;  %v874_v31 = vsel %vm424_vm8, %v872_v30, 0.0 }
 0x2cf   :  { %875 = vadd.xlane.f32.xlu1 %v874_v31  ;;  %1107 = vmatmul.mubr.msk.f32.vlgmr.msra.gmra.mxu1 %vm424_vm8, %v873_v29 }
 0x2d0   :  { %878 = vadd.xlane.f32.xlu0 %v877_v32 }
 0x2d3   :  { %440 = vadd.xlane.f32.xlu1 %v439_v33 }
 0x2d4   :  { %443 = vadd.xlane.f32.xlu0 %v442_v34 }
 0x349   :  { %v579_v36 = vpop.xlane.xlu1 %578 }
 0x34a   :  { %v581_v43 = vmax.f32 %v579_v36, 1e-30 }
 0x34d   :  { %v729_v50 = vpop.xlane.xlu0 %728 }
 0x34e   :  { %v731_v45 = vmax.f32 %v729_v50, 1e-30 }
 0x351   :  { %v576_v35 = vpop.xlane.xlu0 %575 }
 0x352   :  { %v580_v44 = vmax.f32 %v576_v35, 1e-30 }
 0x355   :  { %v726_v60 = vpop.xlane.xlu0 %725 }
 0x356   :  { %v730_v46 = vmax.f32 %v726_v60, 1e-30 }
 0x358   :  { %v876_v38 = vpop.xlane.xlu1 %875 }
 0x359   :  { %v879_v37 = vpop.xlane.xlu0 %878  ;;  %v880_v47 = vmax.f32 %v876_v38, 1e-30 }
 0x35a   :  { %v881_v53 = vmax.f32 %v879_v37, 1e-30 }
 0x35c   :  { %v441_v40 = vpop.xlane.xlu1 %440 }
 0x35d   :  { %v444_v39 = vpop.xlane.xlu0 %443  ;;  %v445_v42 = vmax.f32 %v441_v40, 1e-30 }
 0x35e   :  { %v446_v41 = vmax.f32 %v444_v39, 1e-30 }
 0x360   :  { %1147 = vrcp.f32 %v446_v41 }
 0x361   :  { %1149 = vrcp.f32 %v445_v42 }
 0x362   :  { %1151 = vrcp.f32 %v581_v43 }
 0x363   :  { %1153 = vrcp.f32 %v580_v44 }
 0x364   :  { %1155 = vrcp.f32 %v731_v45 }
 0x365   :  { %1157 = vrcp.f32 %v730_v46 }
 0x366   :  { %1159 = vrcp.f32 %v880_v47 }
 0x367   :  { %1161 = vrcp.f32 %v881_v53 }
 0x36d   :  { %v1148_v48 = vpop.eup %1147 }
 0x36e   :  { %v1150_v52 = vpop.eup %1149 }
 0x36f   :  { %v1152_v56 = vpop.eup %1151 }
 0x370   :  { %v1154_v59 = vpop.eup %1153 }
 0x371   :  { %v1156_v0 = vpop.eup %1155 }
 0x372   :  { %v1158_v3 = vpop.eup %1157 }
 0x373   :  { %v1160_v4 = vpop.eup %1159 }
 0x374   :  { %v1162_v8 = vpop.eup %1161 }
 0x381   :  { %v1087_v49 = vpop.f32.mrf.mxu0 }
 0x382   :  { %v531_v51 = vmul.f32 %v1148_v48, %v1087_v49 }
 0x383   :  { %v519_v54 = vpop.f32.mrf.mxu0 }
 0x384   :  { %533 = vst.msk [vmem:[#allocation5 + $0x8] sm:$0xff] %vm55_vm0, %v531_v51  ;;  %v530_v55 = vmul.f32 %v1150_v52, %v519_v54 }
 0x386   :  { %532 = vst.msk [vmem:[#allocation5] sm:$0xff] %vm55_vm0, %v530_v55  ;;  %v1094_v57 = vpop.f32.mrf.mxu1  ;;  %vm681_vm0 = vcmask 130112  }
 0x387   :  { %v672_v58 = vmul.f32 %v1152_v56, %v1094_v57 }
 0x388   :  { %v660_v61 = vpop.f32.mrf.mxu1 }
 0x389   :  { %v671_v63 = vmul.f32 %v1154_v59, %v660_v61  ;;  %677 = vrot.lane.b32.xlu0 %v672_v58, %s1209_s6 }
 0x38b   :  { %v1101_v20 = vpop.f32.mrf.mxu0  ;;  %675 = vrot.lane.b32.xlu1 %v671_v63, %s1209_s6 }
 0x38c   :  { %v822_v62 = vmul.f32 %v1156_v0, %v1101_v20 }
 0x38d   :  { %v810_v1 = vpop.f32.mrf.mxu0 }
 0x38e   :  { %v821_v5 = vmul.f32 %v1158_v3, %v810_v1 }
 0x38f   :  { %v1108_v2 = vpop.f32.mrf.mxu1  ;;  %827 = vrot.lane.b32.xlu1 %v822_v62, %s1210_s13 }
 0x390   :  { %v972_v9 = vmul.f32 %v1162_v8, %v1108_v2 }
 0x391   :  { %v960_v6 = vpop.f32.mrf.mxu1 }
 0x392   :  { %v971_v7 = vmul.f32 %v1160_v4, %v960_v6 }
 0x393   :  { %825 = vrot.lane.b32.xlu1 %v821_v5, %s1210_s13 }
 0x394   :  { %975 = vrot.lane.b32.xlu0 %v971_v7, %s1211_s14 }
 0x397   :  { %977 = vrot.lane.b32.xlu1 %v972_v9, %s1211_s14 }
 0x3fb   :  { %v678_v10 = vpop.permute.xlu0 %677 }
 0x3fc   :  { %683 = vst.msk [vmem:[#allocation5 + $0x8] sm:$0xff] %vm681_vm0, %v678_v10 }
 0x3fd   :  { %v676_v11 = vpop.permute.xlu1 %675 }
 0x3fe   :  { %682 = vst.msk [vmem:[#allocation5] sm:$0xff] %vm681_vm0, %v676_v11 }
 0x401   :  { %v828_v12 = vpop.permute.xlu1 %827 }
 0x402   :  { %833 = vst.msk [vmem:[#allocation5 + $0x8] sm:$0xff] %vm831_vm1, %v828_v12 }
 0x405   :  { %v826_v13 = vpop.permute.xlu1 %825 }
 0x406   :  { %v976_v14 = vpop.permute.xlu0 %975  ;;  %832 = vst.msk [vmem:[#allocation5] sm:$0xff] %vm831_vm1, %v826_v13 }
 0x407   :  { %982 = vst.msk [vmem:[#allocation5] sm:$0xff] %vm981_vm2, %v976_v14 }
 0x409   :  { %v978_v15 = vpop.permute.xlu1 %977 }
 0x40a   :  { %983 = vst.msk [vmem:[#allocation5 + $0x8] sm:$0xff] %vm981_vm2, %v978_v15 }
 0x40b   :  { %1186 = shalt.err (!%p1183_p9)
}
 0x40c   :  { %s1213_s18 = smov 128  }
 0x40d   :  { %995 = dma.vmem_to_hbm [thread:$0]  %s990_s16, 256, %s1431_s8, [#allocation3], %s1213_s18, %s1213_s18, %s1209_s6  }
 0x40e   :  { %1197 = dma.done.wait [#allocation3], 256  }
 0x40f   :  { %1198 = vsyncadd [#allocation3], 4294967040 }
 0x410   :  { %999 = vsyncpa [#allocation3], 1 }
 0x411   :  { %1000 = vsyncpa [#allocation4], 1 }

</bundles_post_ra>
